<compile_context>
chip_gen: v5e
topology: v5e:2x2
jax: 0.10.0
libtpu: 0.0.40
codegen_flags: <defaults>
</compile_context>

<pallas_src>
import functools

import jax
import jax.numpy as jnp
from jax.experimental import pallas as pl
from jax.experimental.pallas import tpu as pltpu

_VMEM_BLOCK_BUDGET = 8 * 1024 * 1024   # per-step working-set target (all gens)


def _largest_divisor_leq(n, cap):
    cap = max(1, min(n, cap))
    for d in range(cap, 0, -1):
        if n % d == 0:
            return d
    return 1


def _pad_kernel(x_ref, o_ref, *, pad, H, W):
    x = x_ref[...]                                            # (B, H, W)
    # Circular wrap along W: [last `pad` cols | x | first `pad` cols].
    mid = jnp.concatenate([x[:, :, W - pad:], x, x[:, :, :pad]], axis=2)
    # Zero rows for the H pad (corners stay zero, matching the PyTorch module,
    # whose wrap source is the already-zero-padded tensor).
    zrow = jnp.zeros((x.shape[0], pad, W + 2 * pad), x.dtype)
    o_ref[...] = jnp.concatenate([zrow, mid, zrow], axis=1)   # one full-block store


def circular_padding(x, pad):
    """CircularPadding.forward for NCHW input, as one Pallas TPU kernel."""
    if pad == 0:
        return x
    N, C, H, W = x.shape
    assert pad <= W and pad <= H, "pad must not exceed spatial dims"
    Hp, Wp = H + 2 * pad, W + 2 * pad

    M = N * C
    xf = x.reshape(M, H, W)

    # Largest image-count block whose double-buffered in+out tiles fit budget.
    bytes_per_img = (H * W + Hp * Wp) * x.dtype.itemsize * 2
    B = _largest_divisor_leq(M, _VMEM_BLOCK_BUDGET // max(1, bytes_per_img))

    kernel = functools.partial(_pad_kernel, pad=pad, H=H, W=W)
    out = pl.pallas_call(
        kernel,
        grid=(M // B,),
        in_specs=[pl.BlockSpec((B, H, W), lambda i: (i, 0, 0))],
        out_specs=pl.BlockSpec((B, Hp, Wp), lambda i: (i, 0, 0)),
        out_shape=jax.ShapeDtypeStruct((M, Hp, Wp), x.dtype),
        compiler_params=pltpu.CompilerParams(
            dimension_semantics=("parallel",),
            vmem_limit_bytes=32 * 1024 * 1024),
    )(xf)
    return out.reshape(N, C, Hp, Wp)


def _circular_padding_ref(x, pad):
    """Pure-JAX transcription of the PyTorch module (reference for checking)."""
    if pad == 0:
        return x
    xp = jnp.pad(x, ((0, 0), (0, 0), (pad, pad), (pad, pad)))
    xp = xp.at[:, :, :, :pad].set(xp[:, :, :, -2 * pad:-pad])
    xp = xp.at[:, :, :, -pad:].set(xp[:, :, :, pad:2 * pad])
    return xp


if __name__ == "__main__":
    key = jax.random.PRNGKey(0)
    x = jax.random.normal(key, (2, 4, 16, 16), jnp.float32)   # NCHW, like PyTorch
    pad = 4                                                   # e.g. the 9x9-conv pad

    fwd = jax.jit(functools.partial(circular_padding, pad=pad))
    y = fwd(x)
    jax.block_until_ready(y)

    assert y.shape == (2, 4, 16 + 2 * pad, 16 + 2 * pad), y.shape
    y_ref = _circular_padding_ref(x, pad)
    assert bool(jnp.array_equal(y, y_ref)), "mismatch vs PyTorch-equivalent reference"
    print("KERNEL_OK")
</pallas_src>

<mosaic_0001>
module attributes {stable_mosaic.version = 11 : i64} {
  func.func @_pad_kernel(%arg0: i32, %arg1: memref<8x16x16xf32, #tpu.memory_space<vmem>>, %arg2: memref<8x24x24xf32, #tpu.memory_space<vmem>>) attributes {dimension_semantics = [#tpu.dimension_semantics<parallel>], iteration_bounds = array<i64: 1>, scalar_prefetch = 0 : i64, scratch_operands = 0 : i64, tpu.core_type = #tpu.core_type<tc>, window_params = [{transform_indices = @transform_0, window_bounds = array<i64: 8, 16, 16>}, {transform_indices = @transform_1, window_bounds = array<i64: 8, 24, 24>}]} {
    %c0 = arith.constant 0 : index
    %c0_0 = arith.constant 0 : index
    %c0_1 = arith.constant 0 : index
    %0 = vector.load %arg1[%c0, %c0_0, %c0_1] : memref<8x16x16xf32, #tpu.memory_space<vmem>>, vector<8x16x16xf32>
    %1 = vector.extract_strided_slice %0 {offsets = [0, 0, 12], sizes = [8, 16, 4], strides = [1, 1, 1]} : vector<8x16x16xf32> to vector<8x16x4xf32>
    %2 = vector.extract_strided_slice %0 {offsets = [0, 0, 0], sizes = [8, 16, 4], strides = [1, 1, 1]} : vector<8x16x16xf32> to vector<8x16x4xf32>
    %3 = tpu.concatenate %1, %0, %2 in 2 : vector<8x16x4xf32>, vector<8x16x16xf32>, vector<8x16x4xf32> -> vector<8x16x24xf32>
    %cst = arith.constant 0.000000e+00 : f32
    %4 = vector.broadcast %cst : f32 to vector<8x4x24xf32>
    %5 = tpu.concatenate %4, %3, %4 in 1 : vector<8x4x24xf32>, vector<8x16x24xf32>, vector<8x4x24xf32> -> vector<8x24x24xf32>
    %c0_2 = arith.constant 0 : index
    %c0_3 = arith.constant 0 : index
    %c0_4 = arith.constant 0 : index
    %6 = vector.load %arg2[%c0_2, %c0_3, %c0_4] : memref<8x24x24xf32, #tpu.memory_space<vmem>>, vector<8x24x24xf32>
    tpu.vector_store %arg2[%c0_2, %c0_3, %c0_4], %5 {strides = array<i32>} : memref<8x24x24xf32, #tpu.memory_space<vmem>>, vector<8x24x24xf32>,
    return
  }
  func.func @transform_0(%arg0: i32) -> (i32, i32, i32) {
    %c0_i32 = arith.constant 0 : i32
    %c0_i32_0 = arith.constant 0 : i32
    %c0_i32_1 = arith.constant 0 : i32
    return %arg0, %c0_i32, %c0_i32_0 : i32, i32, i32
  }
  func.func @transform_1(%arg0: i32) -> (i32, i32, i32) {
    %c0_i32 = arith.constant 0 : i32
    %c0_i32_0 = arith.constant 0 : i32
    %c0_i32_1 = arith.constant 0 : i32
    return %arg0, %c0_i32, %c0_i32_0 : i32, i32, i32
  }
}

</mosaic_0001>

<bundles_post_ra>
// kernel: circular_padding.1
= control target key start
LH: loop header
LB: loop body
LE: loop exit
PB: predicated region body
PF: predicated region fallthrough
CT: control target
= control target key end

     0   :  { %6 = vsyncpa [#allocation3], 0  ;;  %s590_s0 = inlined_call_operand.hbm [shape: f32[8,16,16], index: 0, kind: input, shape index: {}]   ;;  %s591_s1 = inlined_call_operand.hbm [shape: f32[8,24,24], index: 1, kind: output, shape index: {}]  }
   0x1   :  { %7 = vsyncpa [#allocation4], 0  ;;  %s12_s8 = sshll.u32 %s590_s0, 4  ;;  %s419_s9 = smov [#allocation2]   ;;  %s13_s8 = int_to_ptr.hbm [resolvable:$true] %s12_s8 }
   0x2   :  { %s14_s10 = sshll.u32 %s419_s9, 4  ;;  %s420_s11 = smov 128   ;;  %s15_s10 = int_to_ptr.vmem [resolvable:$true] %s14_s10 }
   0x3   :  { %s421_s12 = smov 8  }
   0x4   :  { %20 = dma.hbm_to_vmem [thread:$0]  %s13_s8, 2048, %s15_s10, [#allocation3], %s420_s11, %s420_s11, %s421_s12  }
   0x5   :  { %415 = dma.done.wait [#allocation3], 2048  }
   0x6   :  { %416 = vsyncadd [#allocation3], 4294965248  ;;  %v29_v0 = vld [vmem:[#allocation2 + $0x20] sm:$0xff]  ;;  %v27_v1 = vld [vmem:[#allocation2 + $0x10] sm:$0xff]  ;;  %s422_s13 = smov 116   ;;  %s423_s0 = smov 4  }
   0x7   :  { %v25_v2 = vld [vmem:[#allocation2] sm:$0xff]  ;;  %65 = vrot.lane.b32.xlu2 %v29_v0, %s422_s13  ;;  %61 = vrot.lane.b32.xlu1 %v27_v1, %s422_s13  ;;  %v30_v3 = vld [vmem:[#allocation2 + $0x28] sm:$0xff]  ;;  %v28_v4 = vld [vmem:[#allocation2 + $0x18] sm:$0xff]  ;;  %s424_s14 = smov 20   ;;  %vm201_vm0 = vcmask 31744   ;;  %vm218_vm1 = vcmask 162816  }
   0x8   :  { %57 = vrot.lane.b32.xlu0 %v25_v2, %s422_s13  ;;  %v26_v5 = vld [vmem:[#allocation2 + $0x8] sm:$0xff]  ;;  %v33_v6 = vld [vmem:[#allocation2 + $0x40] sm:$0xff]  ;;  %v32_v7 = vld [vmem:[#allocation2 + $0x38] sm:$0xff]  ;;  %vm251_vm2 = vcmask 1043456   ;;  %vm316_vm3 = vcmask 195584   ;;  %s425_s15 = smov [#allocation5]  }
   0x9   :  { %v31_v8 = vld [vmem:[#allocation2 + $0x30] sm:$0xff]  ;;  %v36_v9 = vld [vmem:[#allocation2 + $0x58] sm:$0xff]  ;;  %v34_v11 = vld [vmem:[#allocation2 + $0x48] sm:$0xff]  ;;  %s345_s16 = sshll.u32 %s425_s15, 4  ;;  %s347_s19 = sshll.u32 %s591_s1, 4  ;;  %s346_s16 = int_to_ptr.vmem [resolvable:$true] %s345_s16  ;;  %s348_s19 = int_to_ptr.hbm [resolvable:$true] %s347_s19 }
   0xa   :  { %v35_v10 = vld [vmem:[#allocation2 + $0x50] sm:$0xff]  ;;  %v38_v13 = vld [vmem:[#allocation2 + $0x68] sm:$0xff]  ;;  %v37_v14 = vld [vmem:[#allocation2 + $0x60] sm:$0xff] }
   0xb   :  { %v39_v12 = vld [vmem:[#allocation2 + $0x70] sm:$0xff]  ;;  %v40_v15 = vld [vmem:[#allocation2 + $0x78] sm:$0xff] }
   0xf   :  { %67 = vrot.lane.b32.xlu2 %v30_v3, %s422_s13  ;;  %63 = vrot.lane.b32.xlu1 %v28_v4, %s422_s13 }
  0x10   :  { %59 = vrot.lane.b32.xlu0 %v26_v5, %s422_s13 }
  0x17   :  { %73 = vrot.lane.b32.xlu2 %v33_v6, %s422_s13  ;;  %71 = vrot.lane.b32.xlu1 %v32_v7, %s422_s13 }
  0x18   :  { %69 = vrot.lane.b32.xlu0 %v31_v8, %s422_s13 }
  0x1f   :  { %79 = vrot.lane.b32.xlu2 %v36_v9, %s422_s13  ;;  %77 = vrot.lane.b32.xlu1 %v35_v10, %s422_s13 }
  0x20   :  { %75 = vrot.lane.b32.xlu0 %v34_v11, %s422_s13 }
  0x27   :  { %85 = vrot.lane.b32.xlu2 %v39_v12, %s422_s13  ;;  %83 = vrot.lane.b32.xlu1 %v38_v13, %s422_s13 }
  0x28   :  { %81 = vrot.lane.b32.xlu0 %v37_v14, %s422_s13 }
  0x2f   :  { %107 = vrot.lane.b32.xlu2 %v26_v5, %s423_s0  ;;  %105 = vrot.lane.b32.xlu1 %v25_v2, %s423_s0 }
  0x30   :  { %87 = vrot.lane.b32.xlu0 %v40_v15, %s422_s13 }
  0x37   :  { %113 = vrot.lane.b32.xlu2 %v29_v0, %s423_s0  ;;  %111 = vrot.lane.b32.xlu1 %v28_v4, %s423_s0 }
  0x38   :  { %109 = vrot.lane.b32.xlu0 %v27_v1, %s423_s0 }
  0x3f   :  { %119 = vrot.lane.b32.xlu2 %v32_v7, %s423_s0  ;;  %117 = vrot.lane.b32.xlu1 %v31_v8, %s423_s0 }
  0x40   :  { %115 = vrot.lane.b32.xlu0 %v30_v3, %s423_s0 }
  0x47   :  { %125 = vrot.lane.b32.xlu2 %v35_v10, %s423_s0  ;;  %123 = vrot.lane.b32.xlu1 %v34_v11, %s423_s0 }
  0x48   :  { %121 = vrot.lane.b32.xlu0 %v33_v6, %s423_s0 }
  0x4f   :  { %131 = vrot.lane.b32.xlu2 %v38_v13, %s423_s0  ;;  %129 = vrot.lane.b32.xlu1 %v37_v14, %s423_s0 }
  0x50   :  { %127 = vrot.lane.b32.xlu0 %v36_v9, %s423_s0 }
  0x57   :  { %153 = vrot.lane.b32.xlu2 %v25_v2, %s424_s14  ;;  %135 = vrot.lane.b32.xlu1 %v40_v15, %s423_s0 }
  0x58   :  { %133 = vrot.lane.b32.xlu0 %v39_v12, %s423_s0 }
  0x5f   :  { %159 = vrot.lane.b32.xlu2 %v28_v4, %s424_s14  ;;  %157 = vrot.lane.b32.xlu1 %v27_v1, %s424_s14 }
  0x60   :  { %155 = vrot.lane.b32.xlu0 %v26_v5, %s424_s14 }
  0x61   :  { %v66_v16 = vpop.permute.xlu2 %65 }
  0x67   :  { %165 = vrot.lane.b32.xlu2 %v31_v8, %s424_s14  ;;  %163 = vrot.lane.b32.xlu1 %v30_v3, %s424_s14 }
  0x68   :  { %161 = vrot.lane.b32.xlu0 %v29_v0, %s424_s14 }
  0x69   :  { %v458_v17 = vpop.permute.xlu2 %67 }
  0x6f   :  { %171 = vrot.lane.b32.xlu2 %v34_v11, %s424_s14  ;;  %169 = vrot.lane.b32.xlu1 %v33_v6, %s424_s14 }
  0x70   :  { %167 = vrot.lane.b32.xlu0 %v32_v7, %s424_s14 }
  0x71   :  { %v460_v18 = vpop.permute.xlu2 %73 }
  0x77   :  { %177 = vrot.lane.b32.xlu2 %v37_v14, %s424_s14  ;;  %175 = vrot.lane.b32.xlu1 %v36_v9, %s424_s14 }
  0x78   :  { %173 = vrot.lane.b32.xlu0 %v35_v10, %s424_s14 }
  0x79   :  { %v462_v19 = vpop.permute.xlu2 %79  ;;  %v464_v20 = vpop.permute.xlu1 %61 }
  0x7a   :  { %v58_v21 = vpop.permute.xlu0 %57 }
  0x7f   :  { %183 = vrot.lane.b32.xlu2 %v40_v15, %s424_s14  ;;  %181 = vrot.lane.b32.xlu1 %v39_v12, %s424_s14 }
  0x80   :  { %179 = vrot.lane.b32.xlu0 %v38_v13, %s424_s14 }
  0x81   :  { %v466_v22 = vpop.permute.xlu2 %85  ;;  %v64_v23 = vpop.permute.xlu1 %63 }
  0x82   :  { %v60_v24 = vpop.permute.xlu0 %59 }
  0x89   :  { %v72_v25 = vpop.permute.xlu1 %71  ;;  %v108_v26 = vpop.permute.xlu2 %107 }
  0x8a   :  { %v469_v27 = vsel %vm201_vm0, %v60_v24, %v108_v26  ;;  %v70_v28 = vpop.permute.xlu0 %69 }
  0x91   :  { %v78_v29 = vpop.permute.xlu1 %77  ;;  %v114_v30 = vpop.permute.xlu2 %113 }
  0x92   :  { %v472_v31 = vsel %vm201_vm0, %v66_v16, %v114_v30  ;;  %v76_v32 = vpop.permute.xlu0 %75 }
  0x99   :  { %v84_v33 = vpop.permute.xlu1 %83  ;;  %v120_v34 = vpop.permute.xlu2 %119 }
  0x9a   :  { %v475_v35 = vsel %vm201_vm0, %v72_v25, %v120_v34  ;;  %v82_v36 = vpop.permute.xlu0 %81 }
  0xa1   :  { %v126_v37 = vpop.permute.xlu2 %125  ;;  %v106_v38 = vpop.permute.xlu1 %105 }
  0xa2   :  { %v478_v39 = vsel %vm201_vm0, %v78_v29, %v126_v37  ;;  %v88_v40 = vpop.permute.xlu0 %87  ;;  %v202_v45 = vsel %vm201_vm0, %v58_v21, %v106_v38 }
  0xa9   :  { %v132_v41 = vpop.permute.xlu2 %131  ;;  %v112_v42 = vpop.permute.xlu1 %111 }
  0xaa   :  { %v481_v43 = vsel %vm201_vm0, %v84_v33, %v132_v41  ;;  %v110_v44 = vpop.permute.xlu0 %109  ;;  %v205_v52 = vsel %vm201_vm0, %v64_v23, %v112_v42 }
  0xab   :  { %v204_v9 = vsel %vm201_vm0, %v464_v20, %v110_v44 }
  0xb1   :  { %v154_v46 = vpop.permute.xlu2 %153  ;;  %v118_v47 = vpop.permute.xlu1 %117 }
  0xb2   :  { %v219_v48 = vsel %vm218_vm1, %v202_v45, %v154_v46  ;;  %v116_v49 = vpop.permute.xlu0 %115  ;;  %v208_v59 = vsel %vm201_vm0, %v70_v28, %v118_v47 }
  0xb3   :  { %v252_v50 = vrot.slane %v219_v48, 4 }
  0xb5   :  { %v300_v51 = vsel %vm251_vm2, 0.0, %v252_v50 }
  0xb6   :  { %317 = vst.msk [vmem:[#allocation5] sm:$0xff] %vm316_vm3, %v300_v51 }
  0xb9   :  { %v160_v53 = vpop.permute.xlu2 %159  ;;  %v124_v54 = vpop.permute.xlu1 %123 }
  0xba   :  { %v222_v55 = vsel %vm218_vm1, %v205_v52, %v160_v53  ;;  %v122_v56 = vpop.permute.xlu0 %121  ;;  %v211_v2 = vsel %vm201_vm0, %v76_v32, %v124_v54 }
  0xbb   :  { %v256_v57 = vrot.slane %v222_v55, 4  ;;  %v210_v47 = vsel %vm201_vm0, %v460_v18, %v122_v56 }
  0xbd   :  { %v309_v58 = vsel %vm251_vm2, %v256_v57, 0.0 }
  0xbe   :  { %322 = vst.msk [vmem:[#allocation5 + $0x28] sm:$0xff] %vm316_vm3, %v309_v58 }
  0xc1   :  { %v166_v60 = vpop.permute.xlu2 %165  ;;  %v130_v61 = vpop.permute.xlu1 %129 }
  0xc2   :  { %v493_v62 = vsel %vm218_vm1, %v208_v59, %v166_v60  ;;  %v495_v63 = vpop.permute.xlu0 %127  ;;  %v214_v10 = vsel %vm201_vm0, %v82_v36, %v130_v61 }
  0xc3   :  { %v261_v0 = vrot.slane %v493_v62, 4  ;;  %v213_v56 = vsel %vm201_vm0, %v462_v19, %v495_v63 }
  0xc5   :  { %v303_v1 = vsel %vm251_vm2, 0.0, %v261_v0 }
  0xc6   :  { %326 = vst.msk [vmem:[#allocation5 + $0x48] sm:$0xff] %vm316_vm3, %v303_v1 }
  0xc9   :  { %v172_v3 = vpop.permute.xlu2 %171  ;;  %v136_v4 = vpop.permute.xlu1 %135 }
  0xca   :  { %v228_v5 = vsel %vm218_vm1, %v211_v2, %v172_v3  ;;  %v502_v6 = vpop.permute.xlu0 %133  ;;  %v217_v30 = vsel %vm201_vm0, %v88_v40, %v136_v4 }
  0xcb   :  { %v265_v7 = vrot.slane %v228_v5, 4  ;;  %v216_v19 = vsel %vm201_vm0, %v466_v22, %v502_v6 }
  0xcd   :  { %v312_v8 = vsel %vm251_vm2, %v265_v7, 0.0 }
  0xce   :  { %331 = vst.msk [vmem:[#allocation5 + $0x70] sm:$0xff] %vm316_vm3, %v312_v8 }
  0xd1   :  { %v178_v11 = vpop.permute.xlu2 %177  ;;  %v158_v12 = vpop.permute.xlu1 %157 }
  0xd2   :  { %v510_v13 = vsel %vm218_vm1, %v214_v10, %v178_v11  ;;  %v221_v14 = vsel %vm218_vm1, %v204_v9, %v158_v12  ;;  %v156_v15 = vpop.permute.xlu0 %155 }
  0xd3   :  { %v270_v16 = vrot.slane %v510_v13, 4  ;;  %v255_v21 = vrot.slane %v221_v14, 4  ;;  %v220_v23 = vsel %vm218_vm1, %v469_v27, %v156_v15  ;;  %v207_v27 = vsel %vm201_vm0, %v458_v17, %v116_v49 }
  0xd4   :  { %v253_v24 = vrot.slane %v220_v23, 4 }
  0xd5   :  { %v306_v20 = vsel %vm251_vm2, 0.0, %v270_v16  ;;  %v257_v25 = vsel %vm251_vm2, %v255_v21, %v256_v57  ;;  %v301_v26 = vsel %vm251_vm2, 0.0, %v255_v21 }
  0xd6   :  { %335 = vst.msk [vmem:[#allocation5 + $0x90] sm:$0xff] %vm316_vm3, %v306_v20  ;;  %v254_v28 = vsel %vm251_vm2, %v252_v50, %v253_v24  ;;  %v308_v29 = vsel %vm251_vm2, %v253_v24, 0.0 }
  0xd7   :  { %320 = vst.msk [vmem:[#allocation5 + $0x18] sm:$0xff] %vm316_vm3, %v301_v26 }
  0xd8   :  { %321 = vst.msk [vmem:[#allocation5 + $0x20] sm:$0xff] %vm316_vm3, %v257_v25 }
  0xd9   :  { %318 = vst.msk [vmem:[#allocation5 + $0x8] sm:$0xff] %vm316_vm3, %v254_v28  ;;  %v184_v32 = vpop.permute.xlu2 %183  ;;  %v164_v33 = vpop.permute.xlu1 %163 }
  0xda   :  { %319 = vst.msk [vmem:[#allocation5 + $0x10] sm:$0xff] %vm316_vm3, %v308_v29  ;;  %v234_v34 = vsel %vm218_vm1, %v217_v30, %v184_v32  ;;  %v224_v36 = vsel %vm218_vm1, %v207_v27, %v164_v33  ;;  %v162_v37 = vpop.permute.xlu0 %161 }
  0xdb   :  { %v274_v38 = vrot.slane %v234_v34, 4  ;;  %v259_v41 = vrot.slane %v224_v36, 4  ;;  %v223_v42 = vsel %vm218_vm1, %v472_v31, %v162_v37 }
  0xdc   :  { %v258_v44 = vrot.slane %v223_v42, 4 }
  0xdd   :  { %v315_v17 = vsel %vm251_vm2, %v274_v38, 0.0  ;;  %v310_v40 = vsel %vm251_vm2, %v259_v41, 0.0 }
  0xde   :  { %340 = vst.msk [vmem:[#allocation5 + $0xb8] sm:$0xff] %vm316_vm3, %v315_v17  ;;  %v260_v45 = vsel %vm251_vm2, %v258_v44, %v259_v41  ;;  %v302_v46 = vsel %vm251_vm2, 0.0, %v258_v44 }
  0xdf   :  { %325 = vst.msk [vmem:[#allocation5 + $0x40] sm:$0xff] %vm316_vm3, %v310_v40 }
  0xe0   :  { %323 = vst.msk [vmem:[#allocation5 + $0x30] sm:$0xff] %vm316_vm3, %v302_v46 }
  0xe1   :  { %324 = vst.msk [vmem:[#allocation5 + $0x38] sm:$0xff] %vm316_vm3, %v260_v45  ;;  %v170_v31 = vpop.permute.xlu1 %169 }
  0xe2   :  { %v227_v48 = vsel %vm218_vm1, %v210_v47, %v170_v31  ;;  %v168_v49 = vpop.permute.xlu0 %167 }
  0xe3   :  { %v264_v50 = vrot.slane %v227_v48, 4  ;;  %v226_v51 = vsel %vm218_vm1, %v475_v35, %v168_v49 }
  0xe4   :  { %v262_v52 = vrot.slane %v226_v51, 4 }
  0xe5   :  { %v266_v53 = vsel %vm251_vm2, %v264_v50, %v265_v7  ;;  %v304_v54 = vsel %vm251_vm2, 0.0, %v264_v50 }
  0xe6   :  { %329 = vst.msk [vmem:[#allocation5 + $0x60] sm:$0xff] %vm316_vm3, %v304_v54  ;;  %v263_v55 = vsel %vm251_vm2, %v261_v0, %v262_v52  ;;  %v311_v18 = vsel %vm251_vm2, %v262_v52, 0.0 }
  0xe7   :  { %330 = vst.msk [vmem:[#allocation5 + $0x68] sm:$0xff] %vm316_vm3, %v266_v53 }
  0xe8   :  { %327 = vst.msk [vmem:[#allocation5 + $0x50] sm:$0xff] %vm316_vm3, %v263_v55 }
  0xe9   :  { %328 = vst.msk [vmem:[#allocation5 + $0x58] sm:$0xff] %vm316_vm3, %v311_v18  ;;  %v176_v35 = vpop.permute.xlu1 %175 }
  0xea   :  { %v230_v57 = vsel %vm218_vm1, %v213_v56, %v176_v35  ;;  %v174_v58 = vpop.permute.xlu0 %173 }
  0xeb   :  { %v268_v59 = vrot.slane %v230_v57, 4  ;;  %v229_v60 = vsel %vm218_vm1, %v478_v39, %v174_v58 }
  0xec   :  { %v267_v61 = vrot.slane %v229_v60, 4 }
  0xed   :  { %v313_v62 = vsel %vm251_vm2, %v268_v59, 0.0 }
  0xee   :  { %334 = vst.msk [vmem:[#allocation5 + $0x88] sm:$0xff] %vm316_vm3, %v313_v62  ;;  %v269_v0 = vsel %vm251_vm2, %v267_v61, %v268_v59  ;;  %v305_v1 = vsel %vm251_vm2, 0.0, %v267_v61 }
  0xef   :  { %332 = vst.msk [vmem:[#allocation5 + $0x78] sm:$0xff] %vm316_vm3, %v305_v1 }
  0xf0   :  { %333 = vst.msk [vmem:[#allocation5 + $0x80] sm:$0xff] %vm316_vm3, %v269_v0 }
  0xf1   :  { %v182_v63 = vpop.permute.xlu1 %181 }
  0xf2   :  { %v233_v39 = vsel %vm218_vm1, %v216_v19, %v182_v63  ;;  %v180_v2 = vpop.permute.xlu0 %179 }
  0xf3   :  { %v273_v3 = vrot.slane %v233_v39, 4  ;;  %v232_v4 = vsel %vm218_vm1, %v481_v43, %v180_v2 }
  0xf4   :  { %v271_v5 = vrot.slane %v232_v4, 4 }
  0xf5   :  { %v275_v7 = vsel %vm251_vm2, %v273_v3, %v274_v38  ;;  %v307_v8 = vsel %vm251_vm2, 0.0, %v273_v3 }
  0xf6   :  { %338 = vst.msk [vmem:[#allocation5 + $0xa8] sm:$0xff] %vm316_vm3, %v307_v8  ;;  %v272_v22 = vsel %vm251_vm2, %v270_v16, %v271_v5  ;;  %v314_v6 = vsel %vm251_vm2, %v271_v5, 0.0 }
  0xf7   :  { %339 = vst.msk [vmem:[#allocation5 + $0xb0] sm:$0xff] %vm316_vm3, %v275_v7 }
  0xf8   :  { %336 = vst.msk [vmem:[#allocation5 + $0x98] sm:$0xff] %vm316_vm3, %v272_v22 }
  0xf9   :  { %337 = vst.msk [vmem:[#allocation5 + $0xa0] sm:$0xff] %vm316_vm3, %v314_v6 }
  0xfa   :  { %353 = dma.vmem_to_hbm [thread:$0]  %s346_s16, 3072, %s348_s19, [#allocation4], %s420_s11, %s420_s11, %s421_s12  }
  0xfb   :  { %417 = dma.done.wait [#allocation4], 3072  }
  0xfc   :  { %418 = vsyncadd [#allocation4], 4294964224 }
  0xfd   :  { %358 = vsyncpa [#allocation3], 1 }
  0xfe   :  { %359 = vsyncpa [#allocation4], 1 }

</bundles_post_ra>
